<compile_context>
chip_gen: v7x
topology: tpu7x:2x2x1
jax: 0.10.0
libtpu: 0.0.40
codegen_flags: <defaults>
</compile_context>

<pallas_src>
import math
import functools

import jax
import jax.numpy as jnp
from jax import lax
from jax.experimental import pallas as pl
from jax.experimental.pallas import tpu as pltpu


def _lstm_kernel(xi_ref, wh_ref, wout_ref, bout_ref, out_ref):
    """One batch block: run the full time recurrence in-kernel.

    xi_ref   : (seq, bb, 3H) f32   precomputed x@W_i + b_i, gate order [f|g|o]
    wh_ref   : (H, 3H)             fused recurrent weights
    wout_ref : (H, C)              output projection weights
    bout_ref : (1, C)              output projection bias
    out_ref  : (bb, C)
    """
    seq, bb, _ = xi_ref.shape
    hidden = wh_ref.shape[0]

    # Load the (small) fused recurrent weight once; reused every step.
    w_h = wh_ref[...]

    def step(t, carry):
        h, c = carry
        # Single fused matmul per step, f32 accumulation on the MXU.
        gates = xi_ref[t] + jnp.dot(h.astype(w_h.dtype), w_h,
                                    preferred_element_type=jnp.float32)
        # Elementwise gate math stays strictly in f32 (VPU/EUP fast path).
        f_t = jax.nn.sigmoid(gates[:, :hidden])
        g_t = jnp.tanh(gates[:, hidden:2 * hidden])
        o_t = jax.nn.sigmoid(gates[:, 2 * hidden:])
        c_new = f_t * c + (1.0 - f_t) * g_t          # coupled gate
        h_new = o_t * jnp.tanh(c_new)
        return h_new, c_new

    h0 = jnp.zeros((bb, hidden), jnp.float32)
    c0 = jnp.zeros((bb, hidden), jnp.float32)
    h_t, _ = lax.fori_loop(0, seq, step, (h0, c0),
                           unroll=True if seq <= 32 else 4)

    # Final Linear projection fused into the kernel.
    out_ref[...] = (
        jnp.dot(h_t.astype(wout_ref.dtype), wout_ref[...],
                preferred_element_type=jnp.float32)
        + bout_ref[...].astype(jnp.float32)
    ).astype(out_ref.dtype)


def _pick_batch_block(batch):
    """Largest power-of-two multiple of 8 (capped) dividing batch, so several
    independent batch blocks can spread across TensorCores (v7x) while every
    block satisfies the (8, 128) sublane rule."""
    for cand in (512, 256, 128, 64, 32, 16, 8):
        if batch % cand == 0:
            return cand
    return batch  # batch not a multiple of 8: single full-batch block


@functools.partial(jax.jit, static_argnames=("matmul_dtype",))
def coupled_gate_lstm(x, params, *, matmul_dtype=jnp.float32):
    """x: (batch, seq_len, input_size) f32; returns (batch, categories) f32."""
    (W_if, W_hf, b_if, W_ig, W_hg, b_ig,
     W_io, W_ho, b_io, W_out, b_out) = params

    batch, seq_len, input_size = x.shape
    hidden = W_if.shape[1]
    categories = W_out.shape[1]
    md = matmul_dtype

    # ---- Fuse the three gates along the output axis, order [f | g | o]. ----
    W_i = jnp.concatenate([W_if, W_ig, W_io], axis=1)        # (I, 3H)
    W_h = jnp.concatenate([W_hf, W_hg, W_ho], axis=1)        # (H, 3H)
    b_i = jnp.concatenate([b_if, b_ig, b_io], axis=0)        # (3H,)

    # ---- Hoist the input projection out of the recurrence: one big matmul
    # done by XLA on the MXU, with the biases folded in (matches the per-step
    # x@W + h@W + b up to fp reassociation). Layout (seq, batch, 3H) so the
    # kernel can index time along the cheap leading axis. ----
    xi = jnp.einsum("bsi,ig->sbg", x.astype(md), W_i.astype(md),
                    preferred_element_type=jnp.float32)
    xi = xi + b_i.astype(jnp.float32)[None, None, :]          # (S, B, 3H) f32

    bb = _pick_batch_block(batch)
    n_blocks = batch // bb

    b_out2 = b_out.reshape(1, categories).astype(jnp.float32)

    const = lambda shape: pl.BlockSpec(shape, lambda b: (0,) * len(shape))

    grid_spec = pltpu.PrefetchScalarGridSpec(
        num_scalar_prefetch=0,
        grid=(n_blocks,),
        in_specs=[
            pl.BlockSpec((seq_len, bb, 3 * hidden), lambda b: (0, b, 0)),  # XI
            const((hidden, 3 * hidden)),    # W_h (fused, constant index)
            const((hidden, categories)),    # W_out
            const((1, categories)),         # b_out
        ],
        out_specs=pl.BlockSpec((bb, categories), lambda b: (b, 0)),
    )

    return pl.pallas_call(
        _lstm_kernel,
        out_shape=jax.ShapeDtypeStruct((batch, categories), jnp.float32),
        grid_spec=grid_spec,
        compiler_params=pltpu.CompilerParams(
            # batch blocks are fully independent -> megacore-shardable on v7x
            dimension_semantics=("parallel",)),
    )(xi, W_h.astype(md), W_out.astype(md), b_out2)


def init_params(key, input_size, hidden_size, categories):
    """Deterministic init matching the PyTorch module's init_weights():
    uniform(-stdv, stdv) for everything, then b_if = 1."""
    stdv = 1.0 / math.sqrt(hidden_size)
    ks = jax.random.split(key, 11)
    u = lambda k, shape: jax.random.uniform(
        k, shape, jnp.float32, minval=-stdv, maxval=stdv)

    W_if = u(ks[0], (input_size, hidden_size))
    W_hf = u(ks[1], (hidden_size, hidden_size))
    b_if = jnp.ones((hidden_size,), jnp.float32)          # constant_(b_if, 1)
    W_ig = u(ks[2], (input_size, hidden_size))
    W_hg = u(ks[3], (hidden_size, hidden_size))
    b_ig = u(ks[4], (hidden_size,))
    W_io = u(ks[5], (input_size, hidden_size))
    W_ho = u(ks[6], (hidden_size, hidden_size))
    b_io = u(ks[7], (hidden_size,))
    # nn.Linear(hidden, categories): stored directly as (hidden, categories)
    W_out = u(ks[8], (hidden_size, categories))
    b_out = u(ks[9], (categories,))
    return (W_if, W_hf, b_if, W_ig, W_hg, b_ig,
            W_io, W_ho, b_io, W_out, b_out)


def reference(x, params):
    """Pure-JAX reference mirroring the PyTorch forward (unfused)."""
    (W_if, W_hf, b_if, W_ig, W_hg, b_ig,
     W_io, W_ho, b_io, W_out, b_out) = params
    batch, seq_len, _ = x.shape
    hidden = W_if.shape[1]
    h = jnp.zeros((batch, hidden), jnp.float32)
    c = jnp.zeros((batch, hidden), jnp.float32)
    for t in range(seq_len):
        x_t = x[:, t, :]
        f = jax.nn.sigmoid(x_t @ W_if + h @ W_hf + b_if)
        g = jnp.tanh(x_t @ W_ig + h @ W_hg + b_ig)
        o = jax.nn.sigmoid(x_t @ W_io + h @ W_ho + b_io)
        c = f * c + (1.0 - f) * g
        h = o * jnp.tanh(c)
    return h @ W_out + b_out


if __name__ == "__main__":
    batch, seq_len, input_size, hidden_size, categories = 8, 8, 16, 32, 8

    key = jax.random.PRNGKey(0)
    k_x, k_p = jax.random.split(key)
    x = jax.random.normal(k_x, (batch, seq_len, input_size), jnp.float32)
    params = init_params(k_p, input_size, hidden_size, categories)

    out = coupled_gate_lstm(x, params)          # f32 matmuls (tight tolerance)
    out = jax.block_until_ready(out)

    ref = reference(x, params)
    assert out.shape == (batch, categories)
    assert jnp.allclose(out, ref, atol=1e-5, rtol=1e-5), (
        float(jnp.max(jnp.abs(out - ref))))

    # For production on v6e/v7x: coupled_gate_lstm(x, params,
    #   matmul_dtype=jnp.bfloat16) halves weight VMEM and uses the bf16 MXU
    # path (f32 accumulation kept; elementwise math stays f32).

    print("KERNEL_OK")
</pallas_src>

<mosaic_0001>
module attributes {stable_mosaic.version = 11 : i64} {
  func.func @_lstm_kernel(%arg0: i32, %arg1: memref<8x8x96xf32, #tpu.memory_space<vmem>>, %arg2: memref<32x96xf32, #tpu.memory_space<vmem>>, %arg3: memref<32x8xf32, #tpu.memory_space<vmem>>, %arg4: memref<1x8xf32, #tpu.memory_space<vmem>>, %arg5: memref<8x8xf32, #tpu.memory_space<vmem>>) attributes {dimension_semantics = [#tpu.dimension_semantics<parallel>], iteration_bounds = array<i64: 1>, scalar_prefetch = 0 : i64, scratch_operands = 0 : i64, tpu.core_type = #tpu.core_type<tc>, window_params = [{transform_indices = @transform_0, window_bounds = array<i64: 8, 8, 96>}, {pipeline_mode = #tpu.pipeline_mode<synchronous>, transform_indices = @transform_1, window_bounds = array<i64: 32, 96>}, {pipeline_mode = #tpu.pipeline_mode<synchronous>, transform_indices = @transform_2, window_bounds = array<i64: 32, 8>}, {pipeline_mode = #tpu.pipeline_mode<synchronous>, transform_indices = @transform_3, window_bounds = array<i64: 1, 8>}, {transform_indices = @transform_4, window_bounds = array<i64: 8, 8>}]} {
    %c0 = arith.constant 0 : index
    %c0_0 = arith.constant 0 : index
    %0 = vector.load %arg2[%c0, %c0_0] : memref<32x96xf32, #tpu.memory_space<vmem>>, vector<32x96xf32>
    %cst = arith.constant 0.000000e+00 : f32
    %1 = vector.broadcast %cst : f32 to vector<8x32xf32>
    %cst_1 = arith.constant 0.000000e+00 : f32
    %2 = vector.broadcast %cst_1 : f32 to vector<8x32xf32>
    %c0_i32 = arith.constant 0 : i32
    %3 = arith.index_cast %c0_i32 : i32 to index
    %c0_2 = arith.constant 0 : index
    %c0_3 = arith.constant 0 : index
    %4 = vector.load %arg1[%3, %c0_2, %c0_3] : memref<8x8x96xf32, #tpu.memory_space<vmem>>, vector<1x8x96xf32>
    %5 = vector.shape_cast %4 : vector<1x8x96xf32> to vector<8x96xf32>
    %cst_4 = arith.constant dense<0.000000e+00> : vector<8x96xf32>
    %6 = tpu.matmul %1, %0, %cst_4 {dimension_numbers = #tpu.dot_dimension_numbers<[1], [0], [0], [1], [0, 0, 1, 1], [], []>} : vector<8x32xf32>, vector<32x96xf32>, vector<8x96xf32> -> vector<8x96xf32>
    %7 = arith.addf %5, %6 : vector<8x96xf32>
    %8 = vector.extract_strided_slice %7 {offsets = [0, 0], sizes = [8, 32], strides = [1, 1]} : vector<8x96xf32> to vector<8x32xf32>
    %9 = arith.negf %8 : vector<8x32xf32>
    %10 = math.exp %9 : vector<8x32xf32>
    %cst_5 = arith.constant 1.000000e+00 : f32
    %11 = vector.broadcast %cst_5 : f32 to vector<8x32xf32>
    %12 = arith.addf %11, %10 : vector<8x32xf32>
    %13 = arith.divf %11, %12 : vector<8x32xf32>
    %14 = vector.extract_strided_slice %7 {offsets = [0, 32], sizes = [8, 32], strides = [1, 1]} : vector<8x96xf32> to vector<8x32xf32>
    %15 = math.tanh %14 : vector<8x32xf32>
    %16 = vector.extract_strided_slice %7 {offsets = [0, 64], sizes = [8, 32], strides = [1, 1]} : vector<8x96xf32> to vector<8x32xf32>
    %17 = arith.negf %16 : vector<8x32xf32>
    %18 = math.exp %17 : vector<8x32xf32>
    %cst_6 = arith.constant 1.000000e+00 : f32
    %19 = vector.broadcast %cst_6 : f32 to vector<8x32xf32>
    %20 = arith.addf %19, %18 : vector<8x32xf32>
    %21 = arith.divf %19, %20 : vector<8x32xf32>
    %22 = arith.mulf %13, %2 : vector<8x32xf32>
    %cst_7 = arith.constant 1.000000e+00 : f32
    %23 = vector.broadcast %cst_7 : f32 to vector<8x32xf32>
    %24 = arith.subf %23, %13 : vector<8x32xf32>
    %25 = arith.mulf %24, %15 : vector<8x32xf32>
    %26 = arith.addf %22, %25 : vector<8x32xf32>
    %27 = math.tanh %26 : vector<8x32xf32>
    %28 = arith.mulf %21, %27 : vector<8x32xf32>
    %c1_i32 = arith.constant 1 : i32
    %29 = arith.index_cast %c1_i32 : i32 to index
    %c0_8 = arith.constant 0 : index
    %c0_9 = arith.constant 0 : index
    %30 = vector.load %arg1[%29, %c0_8, %c0_9] : memref<8x8x96xf32, #tpu.memory_space<vmem>>, vector<1x8x96xf32>
    %31 = vector.shape_cast %30 : vector<1x8x96xf32> to vector<8x96xf32>
    %cst_10 = arith.constant dense<0.000000e+00> : vector<8x96xf32>
    %32 = tpu.matmul %28, %0, %cst_10 {dimension_numbers = #tpu.dot_dimension_numbers<[1], [0], [0], [1], [0, 0, 1, 1], [], []>} : vector<8x32xf32>, vector<32x96xf32>, vector<8x96xf32> -> vector<8x96xf32>
    %33 = arith.addf %31, %32 : vector<8x96xf32>
    %34 = vector.extract_strided_slice %33 {offsets = [0, 0], sizes = [8, 32], strides = [1, 1]} : vector<8x96xf32> to vector<8x32xf32>
    %35 = arith.negf %34 : vector<8x32xf32>
    %36 = math.exp %35 : vector<8x32xf32>
    %cst_11 = arith.constant 1.000000e+00 : f32
    %37 = vector.broadcast %cst_11 : f32 to vector<8x32xf32>
    %38 = arith.addf %37, %36 : vector<8x32xf32>
    %39 = arith.divf %37, %38 : vector<8x32xf32>
    %40 = vector.extract_strided_slice %33 {offsets = [0, 32], sizes = [8, 32], strides = [1, 1]} : vector<8x96xf32> to vector<8x32xf32>
    %41 = math.tanh %40 : vector<8x32xf32>
    %42 = vector.extract_strided_slice %33 {offsets = [0, 64], sizes = [8, 32], strides = [1, 1]} : vector<8x96xf32> to vector<8x32xf32>
    %43 = arith.negf %42 : vector<8x32xf32>
    %44 = math.exp %43 : vector<8x32xf32>
    %cst_12 = arith.constant 1.000000e+00 : f32
    %45 = vector.broadcast %cst_12 : f32 to vector<8x32xf32>
    %46 = arith.addf %45, %44 : vector<8x32xf32>
    %47 = arith.divf %45, %46 : vector<8x32xf32>
    %48 = arith.mulf %39, %26 : vector<8x32xf32>
    %cst_13 = arith.constant 1.000000e+00 : f32
    %49 = vector.broadcast %cst_13 : f32 to vector<8x32xf32>
    %50 = arith.subf %49, %39 : vector<8x32xf32>
    %51 = arith.mulf %50, %41 : vector<8x32xf32>
    %52 = arith.addf %48, %51 : vector<8x32xf32>
    %53 = math.tanh %52 : vector<8x32xf32>
    %54 = arith.mulf %47, %53 : vector<8x32xf32>
    %c2_i32 = arith.constant 2 : i32
    %55 = arith.index_cast %c2_i32 : i32 to index
    %c0_14 = arith.constant 0 : index
    %c0_15 = arith.constant 0 : index
    %56 = vector.load %arg1[%55, %c0_14, %c0_15] : memref<8x8x96xf32, #tpu.memory_space<vmem>>, vector<1x8x96xf32>
    %57 = vector.shape_cast %56 : vector<1x8x96xf32> to vector<8x96xf32>
    %cst_16 = arith.constant dense<0.000000e+00> : vector<8x96xf32>
    %58 = tpu.matmul %54, %0, %cst_16 {dimension_numbers = #tpu.dot_dimension_numbers<[1], [0], [0], [1], [0, 0, 1, 1], [], []>} : vector<8x32xf32>, vector<32x96xf32>, vector<8x96xf32> -> vector<8x96xf32>
    %59 = arith.addf %57, %58 : vector<8x96xf32>
    %60 = vector.extract_strided_slice %59 {offsets = [0, 0], sizes = [8, 32], strides = [1, 1]} : vector<8x96xf32> to vector<8x32xf32>
    %61 = arith.negf %60 : vector<8x32xf32>
    %62 = math.exp %61 : vector<8x32xf32>
    %cst_17 = arith.constant 1.000000e+00 : f32
    %63 = vector.broadcast %cst_17 : f32 to vector<8x32xf32>
    %64 = arith.addf %63, %62 : vector<8x32xf32>
    %65 = arith.divf %63, %64 : vector<8x32xf32>
    %66 = vector.extract_strided_slice %59 {offsets = [0, 32], sizes = [8, 32], strides = [1, 1]} : vector<8x96xf32> to vector<8x32xf32>
    %67 = math.tanh %66 : vector<8x32xf32>
    %68 = vector.extract_strided_slice %59 {offsets = [0, 64], sizes = [8, 32], strides = [1, 1]} : vector<8x96xf32> to vector<8x32xf32>
    %69 = arith.negf %68 : vector<8x32xf32>
    %70 = math.exp %69 : vector<8x32xf32>
    %cst_18 = arith.constant 1.000000e+00 : f32
    %71 = vector.broadcast %cst_18 : f32 to vector<8x32xf32>
    %72 = arith.addf %71, %70 : vector<8x32xf32>
    %73 = arith.divf %71, %72 : vector<8x32xf32>
    %74 = arith.mulf %65, %52 : vector<8x32xf32>
    %cst_19 = arith.constant 1.000000e+00 : f32
    %75 = vector.broadcast %cst_19 : f32 to vector<8x32xf32>
    %76 = arith.subf %75, %65 : vector<8x32xf32>
    %77 = arith.mulf %76, %67 : vector<8x32xf32>
    %78 = arith.addf %74, %77 : vector<8x32xf32>
    %79 = math.tanh %78 : vector<8x32xf32>
    %80 = arith.mulf %73, %79 : vector<8x32xf32>
    %c3_i32 = arith.constant 3 : i32
    %81 = arith.index_cast %c3_i32 : i32 to index
    %c0_20 = arith.constant 0 : index
    %c0_21 = arith.constant 0 : index
    %82 = vector.load %arg1[%81, %c0_20, %c0_21] : memref<8x8x96xf32, #tpu.memory_space<vmem>>, vector<1x8x96xf32>
    %83 = vector.shape_cast %82 : vector<1x8x96xf32> to vector<8x96xf32>
    %cst_22 = arith.constant dense<0.000000e+00> : vector<8x96xf32>
    %84 = tpu.matmul %80, %0, %cst_22 {dimension_numbers = #tpu.dot_dimension_numbers<[1], [0], [0], [1], [0, 0, 1, 1], [], []>} : vector<8x32xf32>, vector<32x96xf32>, vector<8x96xf32> -> vector<8x96xf32>
    %85 = arith.addf %83, %84 : vector<8x96xf32>
    %86 = vector.extract_strided_slice %85 {offsets = [0, 0], sizes = [8, 32], strides = [1, 1]} : vector<8x96xf32> to vector<8x32xf32>
    %87 = arith.negf %86 : vector<8x32xf32>
    %88 = math.exp %87 : vector<8x32xf32>
    %cst_23 = arith.constant 1.000000e+00 : f32
    %89 = vector.broadcast %cst_23 : f32 to vector<8x32xf32>
    %90 = arith.addf %89, %88 : vector<8x32xf32>
    %91 = arith.divf %89, %90 : vector<8x32xf32>
    %92 = vector.extract_strided_slice %85 {offsets = [0, 32], sizes = [8, 32], strides = [1, 1]} : vector<8x96xf32> to vector<8x32xf32>
    %93 = math.tanh %92 : vector<8x32xf32>
    %94 = vector.extract_strided_slice %85 {offsets = [0, 64], sizes = [8, 32], strides = [1, 1]} : vector<8x96xf32> to vector<8x32xf32>
    %95 = arith.negf %94 : vector<8x32xf32>
    %96 = math.exp %95 : vector<8x32xf32>
    %cst_24 = arith.constant 1.000000e+00 : f32
    %97 = vector.broadcast %cst_24 : f32 to vector<8x32xf32>
    %98 = arith.addf %97, %96 : vector<8x32xf32>
    %99 = arith.divf %97, %98 : vector<8x32xf32>
    %100 = arith.mulf %91, %78 : vector<8x32xf32>
    %cst_25 = arith.constant 1.000000e+00 : f32
    %101 = vector.broadcast %cst_25 : f32 to vector<8x32xf32>
    %102 = arith.subf %101, %91 : vector<8x32xf32>
    %103 = arith.mulf %102, %93 : vector<8x32xf32>
    %104 = arith.addf %100, %103 : vector<8x32xf32>
    %105 = math.tanh %104 : vector<8x32xf32>
    %106 = arith.mulf %99, %105 : vector<8x32xf32>
    %c4_i32 = arith.constant 4 : i32
    %107 = arith.index_cast %c4_i32 : i32 to index
    %c0_26 = arith.constant 0 : index
    %c0_27 = arith.constant 0 : index
    %108 = vector.load %arg1[%107, %c0_26, %c0_27] : memref<8x8x96xf32, #tpu.memory_space<vmem>>, vector<1x8x96xf32>
    %109 = vector.shape_cast %108 : vector<1x8x96xf32> to vector<8x96xf32>
    %cst_28 = arith.constant dense<0.000000e+00> : vector<8x96xf32>
    %110 = tpu.matmul %106, %0, %cst_28 {dimension_numbers = #tpu.dot_dimension_numbers<[1], [0], [0], [1], [0, 0, 1, 1], [], []>} : vector<8x32xf32>, vector<32x96xf32>, vector<8x96xf32> -> vector<8x96xf32>
    %111 = arith.addf %109, %110 : vector<8x96xf32>
    %112 = vector.extract_strided_slice %111 {offsets = [0, 0], sizes = [8, 32], strides = [1, 1]} : vector<8x96xf32> to vector<8x32xf32>
    %113 = arith.negf %112 : vector<8x32xf32>
    %114 = math.exp %113 : vector<8x32xf32>
    %cst_29 = arith.constant 1.000000e+00 : f32
    %115 = vector.broadcast %cst_29 : f32 to vector<8x32xf32>
    %116 = arith.addf %115, %114 : vector<8x32xf32>
    %117 = arith.divf %115, %116 : vector<8x32xf32>
    %118 = vector.extract_strided_slice %111 {offsets = [0, 32], sizes = [8, 32], strides = [1, 1]} : vector<8x96xf32> to vector<8x32xf32>
    %119 = math.tanh %118 : vector<8x32xf32>
    %120 = vector.extract_strided_slice %111 {offsets = [0, 64], sizes = [8, 32], strides = [1, 1]} : vector<8x96xf32> to vector<8x32xf32>
    %121 = arith.negf %120 : vector<8x32xf32>
    %122 = math.exp %121 : vector<8x32xf32>
    %cst_30 = arith.constant 1.000000e+00 : f32
    %123 = vector.broadcast %cst_30 : f32 to vector<8x32xf32>
    %124 = arith.addf %123, %122 : vector<8x32xf32>
    %125 = arith.divf %123, %124 : vector<8x32xf32>
    %126 = arith.mulf %117, %104 : vector<8x32xf32>
    %cst_31 = arith.constant 1.000000e+00 : f32
    %127 = vector.broadcast %cst_31 : f32 to vector<8x32xf32>
    %128 = arith.subf %127, %117 : vector<8x32xf32>
    %129 = arith.mulf %128, %119 : vector<8x32xf32>
    %130 = arith.addf %126, %129 : vector<8x32xf32>
    %131 = math.tanh %130 : vector<8x32xf32>
    %132 = arith.mulf %125, %131 : vector<8x32xf32>
    %c5_i32 = arith.constant 5 : i32
    %133 = arith.index_cast %c5_i32 : i32 to index
    %c0_32 = arith.constant 0 : index
    %c0_33 = arith.constant 0 : index
    %134 = vector.load %arg1[%133, %c0_32, %c0_33] : memref<8x8x96xf32, #tpu.memory_space<vmem>>, vector<1x8x96xf32>
    %135 = vector.shape_cast %134 : vector<1x8x96xf32> to vector<8x96xf32>
    %cst_34 = arith.constant dense<0.000000e+00> : vector<8x96xf32>
    %136 = tpu.matmul %132, %0, %cst_34 {dimension_numbers = #tpu.dot_dimension_numbers<[1], [0], [0], [1], [0, 0, 1, 1], [], []>} : vector<8x32xf32>, vector<32x96xf32>, vector<8x96xf32> -> vector<8x96xf32>
    %137 = arith.addf %135, %136 : vector<8x96xf32>
    %138 = vector.extract_strided_slice %137 {offsets = [0, 0], sizes = [8, 32], strides = [1, 1]} : vector<8x96xf32> to vector<8x32xf32>
    %139 = arith.negf %138 : vector<8x32xf32>
    %140 = math.exp %139 : vector<8x32xf32>
    %cst_35 = arith.constant 1.000000e+00 : f32
    %141 = vector.broadcast %cst_35 : f32 to vector<8x32xf32>
    %142 = arith.addf %141, %140 : vector<8x32xf32>
    %143 = arith.divf %141, %142 : vector<8x32xf32>
    %144 = vector.extract_strided_slice %137 {offsets = [0, 32], sizes = [8, 32], strides = [1, 1]} : vector<8x96xf32> to vector<8x32xf32>
    %145 = math.tanh %144 : vector<8x32xf32>
    %146 = vector.extract_strided_slice %137 {offsets = [0, 64], sizes = [8, 32], strides = [1, 1]} : vector<8x96xf32> to vector<8x32xf32>
    %147 = arith.negf %146 : vector<8x32xf32>
    %148 = math.exp %147 : vector<8x32xf32>
    %cst_36 = arith.constant 1.000000e+00 : f32
    %149 = vector.broadcast %cst_36 : f32 to vector<8x32xf32>
    %150 = arith.addf %149, %148 : vector<8x32xf32>
    %151 = arith.divf %149, %150 : vector<8x32xf32>
    %152 = arith.mulf %143, %130 : vector<8x32xf32>
    %cst_37 = arith.constant 1.000000e+00 : f32
    %153 = vector.broadcast %cst_37 : f32 to vector<8x32xf32>
    %154 = arith.subf %153, %143 : vector<8x32xf32>
    %155 = arith.mulf %154, %145 : vector<8x32xf32>
    %156 = arith.addf %152, %155 : vector<8x32xf32>
    %157 = math.tanh %156 : vector<8x32xf32>
    %158 = arith.mulf %151, %157 : vector<8x32xf32>
    %c6_i32 = arith.constant 6 : i32
    %159 = arith.index_cast %c6_i32 : i32 to index
    %c0_38 = arith.constant 0 : index
    %c0_39 = arith.constant 0 : index
    %160 = vector.load %arg1[%159, %c0_38, %c0_39] : memref<8x8x96xf32, #tpu.memory_space<vmem>>, vector<1x8x96xf32>
    %161 = vector.shape_cast %160 : vector<1x8x96xf32> to vector<8x96xf32>
    %cst_40 = arith.constant dense<0.000000e+00> : vector<8x96xf32>
    %162 = tpu.matmul %158, %0, %cst_40 {dimension_numbers = #tpu.dot_dimension_numbers<[1], [0], [0], [1], [0, 0, 1, 1], [], []>} : vector<8x32xf32>, vector<32x96xf32>, vector<8x96xf32> -> vector<8x96xf32>
    %163 = arith.addf %161, %162 : vector<8x96xf32>
    %164 = vector.extract_strided_slice %163 {offsets = [0, 0], sizes = [8, 32], strides = [1, 1]} : vector<8x96xf32> to vector<8x32xf32>
    %165 = arith.negf %164 : vector<8x32xf32>
    %166 = math.exp %165 : vector<8x32xf32>
    %cst_41 = arith.constant 1.000000e+00 : f32
    %167 = vector.broadcast %cst_41 : f32 to vector<8x32xf32>
    %168 = arith.addf %167, %166 : vector<8x32xf32>
    %169 = arith.divf %167, %168 : vector<8x32xf32>
    %170 = vector.extract_strided_slice %163 {offsets = [0, 32], sizes = [8, 32], strides = [1, 1]} : vector<8x96xf32> to vector<8x32xf32>
    %171 = math.tanh %170 : vector<8x32xf32>
    %172 = vector.extract_strided_slice %163 {offsets = [0, 64], sizes = [8, 32], strides = [1, 1]} : vector<8x96xf32> to vector<8x32xf32>
    %173 = arith.negf %172 : vector<8x32xf32>
    %174 = math.exp %173 : vector<8x32xf32>
    %cst_42 = arith.constant 1.000000e+00 : f32
    %175 = vector.broadcast %cst_42 : f32 to vector<8x32xf32>
    %176 = arith.addf %175, %174 : vector<8x32xf32>
    %177 = arith.divf %175, %176 : vector<8x32xf32>
    %178 = arith.mulf %169, %156 : vector<8x32xf32>
    %cst_43 = arith.constant 1.000000e+00 : f32
    %179 = vector.broadcast %cst_43 : f32 to vector<8x32xf32>
    %180 = arith.subf %179, %169 : vector<8x32xf32>
    %181 = arith.mulf %180, %171 : vector<8x32xf32>
    %182 = arith.addf %178, %181 : vector<8x32xf32>
    %183 = math.tanh %182 : vector<8x32xf32>
    %184 = arith.mulf %177, %183 : vector<8x32xf32>
    %c7_i32 = arith.constant 7 : i32
    %185 = arith.index_cast %c7_i32 : i32 to index
    %c0_44 = arith.constant 0 : index
    %c0_45 = arith.constant 0 : index
    %186 = vector.load %arg1[%185, %c0_44, %c0_45] : memref<8x8x96xf32, #tpu.memory_space<vmem>>, vector<1x8x96xf32>
    %187 = vector.shape_cast %186 : vector<1x8x96xf32> to vector<8x96xf32>
    %cst_46 = arith.constant dense<0.000000e+00> : vector<8x96xf32>
    %188 = tpu.matmul %184, %0, %cst_46 {dimension_numbers = #tpu.dot_dimension_numbers<[1], [0], [0], [1], [0, 0, 1, 1], [], []>} : vector<8x32xf32>, vector<32x96xf32>, vector<8x96xf32> -> vector<8x96xf32>
    %189 = arith.addf %187, %188 : vector<8x96xf32>
    %190 = vector.extract_strided_slice %189 {offsets = [0, 0], sizes = [8, 32], strides = [1, 1]} : vector<8x96xf32> to vector<8x32xf32>
    %191 = arith.negf %190 : vector<8x32xf32>
    %192 = math.exp %191 : vector<8x32xf32>
    %cst_47 = arith.constant 1.000000e+00 : f32
    %193 = vector.broadcast %cst_47 : f32 to vector<8x32xf32>
    %194 = arith.addf %193, %192 : vector<8x32xf32>
    %195 = arith.divf %193, %194 : vector<8x32xf32>
    %196 = vector.extract_strided_slice %189 {offsets = [0, 32], sizes = [8, 32], strides = [1, 1]} : vector<8x96xf32> to vector<8x32xf32>
    %197 = math.tanh %196 : vector<8x32xf32>
    %198 = vector.extract_strided_slice %189 {offsets = [0, 64], sizes = [8, 32], strides = [1, 1]} : vector<8x96xf32> to vector<8x32xf32>
    %199 = arith.negf %198 : vector<8x32xf32>
    %200 = math.exp %199 : vector<8x32xf32>
    %cst_48 = arith.constant 1.000000e+00 : f32
    %201 = vector.broadcast %cst_48 : f32 to vector<8x32xf32>
    %202 = arith.addf %201, %200 : vector<8x32xf32>
    %203 = arith.divf %201, %202 : vector<8x32xf32>
    %204 = arith.mulf %195, %182 : vector<8x32xf32>
    %cst_49 = arith.constant 1.000000e+00 : f32
    %205 = vector.broadcast %cst_49 : f32 to vector<8x32xf32>
    %206 = arith.subf %205, %195 : vector<8x32xf32>
    %207 = arith.mulf %206, %197 : vector<8x32xf32>
    %208 = arith.addf %204, %207 : vector<8x32xf32>
    %209 = math.tanh %208 : vector<8x32xf32>
    %210 = arith.mulf %203, %209 : vector<8x32xf32>
    %c8_i32 = arith.constant 8 : i32
    %c0_50 = arith.constant 0 : index
    %c0_51 = arith.constant 0 : index
    %211 = vector.load %arg3[%c0_50, %c0_51] : memref<32x8xf32, #tpu.memory_space<vmem>>, vector<32x8xf32>
    %cst_52 = arith.constant dense<0.000000e+00> : vector<8x8xf32>
    %212 = tpu.matmul %210, %211, %cst_52 {dimension_numbers = #tpu.dot_dimension_numbers<[1], [0], [0], [1], [0, 0, 1, 1], [], []>} : vector<8x32xf32>, vector<32x8xf32>, vector<8x8xf32> -> vector<8x8xf32>
    %c0_53 = arith.constant 0 : index
    %c0_54 = arith.constant 0 : index
    %213 = vector.load %arg4[%c0_53, %c0_54] : memref<1x8xf32, #tpu.memory_space<vmem>>, vector<1x8xf32>
    %214 = vector.broadcast %213 : vector<1x8xf32> to vector<8x8xf32>
    %215 = arith.addf %212, %214 : vector<8x8xf32>
    %c0_55 = arith.constant 0 : index
    %c0_56 = arith.constant 0 : index
    %216 = vector.load %arg5[%c0_55, %c0_56] : memref<8x8xf32, #tpu.memory_space<vmem>>, vector<8x8xf32>
    tpu.vector_store %arg5[%c0_55, %c0_56], %215 {strides = array<i32>} : memref<8x8xf32, #tpu.memory_space<vmem>>, vector<8x8xf32>,
    return
  }
  func.func @transform_0(%arg0: i32) -> (i32, i32, i32) {
    %c0_i32 = arith.constant 0 : i32
    %c0_i32_0 = arith.constant 0 : i32
    %c0_i32_1 = arith.constant 0 : i32
    return %c0_i32, %arg0, %c0_i32_0 : i32, i32, i32
  }
  func.func @transform_1(%arg0: i32) -> (i32, i32) {
    %c0_i32 = arith.constant 0 : i32
    %c0_i32_0 = arith.constant 0 : i32
    %c0_i32_1 = arith.constant 0 : i32
    return %c0_i32, %c0_i32_0 : i32, i32
  }
  func.func @transform_2(%arg0: i32) -> (i32, i32) {
    %c0_i32 = arith.constant 0 : i32
    %c0_i32_0 = arith.constant 0 : i32
    %c0_i32_1 = arith.constant 0 : i32
    return %c0_i32, %c0_i32_0 : i32, i32
  }
  func.func @transform_3(%arg0: i32) -> (i32, i32) {
    %c0_i32 = arith.constant 0 : i32
    %c0_i32_0 = arith.constant 0 : i32
    %c0_i32_1 = arith.constant 0 : i32
    return %c0_i32, %c0_i32_0 : i32, i32
  }
  func.func @transform_4(%arg0: i32) -> (i32, i32) {
    %c0_i32 = arith.constant 0 : i32
    %c0_i32_0 = arith.constant 0 : i32
    return %arg0, %c0_i32 : i32, i32
  }
}

</mosaic_0001>

<bundles_post_ra>
// kernel: coupled_gate_lstm.1
= control target key start
LH: loop header
LB: loop body
LE: loop exit
PB: predicated region body
PF: predicated region fallthrough
CT: control target
= control target key end

     0   :  { %v1230_v3 = vmov 0.0|0.0   ;;  %vm1231_vm0 = vmmov 0   ;;  %v1232_v6 = vmov 0.0   ;;  %s1413_s0 = inlined_call_operand.vmem [shape: f32[8,8,96], index: 0, kind: input, shape index: {}]   ;;  %s1414_s1 = inlined_call_operand.vmem [shape: f32[32,96], index: 1, kind: input, shape index: {}]   ;;  %s1415_s2 = inlined_call_operand.vmem [shape: f32[32,8], index: 2, kind: input, shape index: {}]   ;;  %s1416_s3 = inlined_call_operand.vmem [shape: f32[1,8], index: 3, kind: input, shape index: {}]   ;;  %s1417_s4 = inlined_call_operand.hbm [shape: f32[8,8], index: 4, kind: output, shape index: {}]  }
   0x1   :  { %v18_v0 = vld [vmem:[%s1414_s1] sm:$0xff]  ;;  %v19_v1 = vld [vmem:[%s1414_s1 + $0x8] sm:$0xff]  ;;  %v20_v2 = vld [vmem:[%s1414_s1 + $0x10] sm:$0xff]  ;;  %1082 = vmatprep.subr.bf16.mxu0 %v1230_v3  ;;  %991 = vmatprep.mubr.msk.f32.mxu0 %vm1231_vm0, %v1232_v6 }
   0x2   :  { %v1271_v4 = vpack.c.bf16 %v19_v1, %v18_v0  ;;  %v21_v5 = vld [vmem:[%s1414_s1 + $0x18] sm:$0xff] }
   0x3   :  { %9 = vsyncpa [#allocation3], 0  ;;  %1088 = vmatprep.subr.bf16.mxu1 %v1230_v3  ;;  %1002 = vmatprep.mubr.msk.f32.mxu1 %vm1231_vm0, %v1232_v6  ;;  %v1282_v7 = vpack.c.bf16 %v21_v5, %v20_v2  ;;  %v22_v8 = vld [vmem:[%s1413_s0] sm:$0xff]  ;;  %s1233_s24 = smov 96   ;;  %s1234_s25 = smov 64   ;;  %vm23_vm1 = vcmask 261120  }
   0x4   :  { %1084 = vmatpush3.bf16.msra.mxu0 %v1271_v4  ;;  %1090 = vmatpush3.bf16.msra.mxu1 %v1271_v4  ;;  %v915_v26 = vld [vmem:[%s1413_s0 + $0x8] sm:$0xff]  ;;  %v918_v44 = vld [vmem:[%s1413_s0 + $0x10] sm:$0xff]  ;;  %v921_v62 = vld [vmem:[%s1413_s0 + $0x18] sm:$0xff]  ;;  %vm898_vm2 = vcmask 64512  }
   0x5   :  { %1085 = vmatprep.subr.bf16.mxu0 %v1230_v3  ;;  %1091 = vmatprep.subr.bf16.mxu1 %v1230_v3 }
   0x8   :  { %1087 = vmatpush3.bf16.msra.mxu0 %v1282_v7  ;;  %1093 = vmatpush3.bf16.msra.mxu1 %v1282_v7 }
   0x9   :  { %1094 = vmatprep.subr.bf16.mxu0 %v1230_v3  ;;  %1100 = vmatprep.subr.bf16.mxu1 %v1230_v3 }
   0xb   :  { %992 = vmatmul.mubr.f32.vlgmr.msra.gmra.mrb[0].mxu0 %v1232_v6 }
   0xc   :  { %1096 = vmatpush3.bf16.msra.mxu0 %v1271_v4  ;;  %1013 = vmatprep.mubr.msk.f32.mxu0 %vm1231_vm0, %v1232_v6 }
   0xd   :  { %1097 = vmatprep.subr.bf16.mxu0 %v1230_v3 }
  0x10   :  { %1099 = vmatpush3.bf16.msra.mxu0 %v1282_v7 }
  0x11   :  { %1106 = vmatprep.subr.bf16.mxu0 %v1230_v3 }
  0xde   :  { %v93_v9 = vpop.f32.mrb[0].mxu0 }
  0xdf   :  { %v97_v10 = vadd.f32 %v93_v9, %v22_v8  ;;  %v993_v11 = vpop.f32.mrb[1].mxu0 }
  0xe1   :  { %1142 = vtanh.f32 %v97_v10  ;;  %v914_v13 = vmul.f32 -1.442695, %v97_v10 }
  0xe3   :  { %1144 = vpow2.f32 %v914_v13 }
  0xeb   :  { %v1143_v12 = vpop.eup %1142 }
  0xec   :  { %108 = vrot.lane.b32.xlu0 %v1143_v12, %s1233_s24 }
  0xed   :  { %v1145_v14 = vpop.eup %1144 }
  0xee   :  { %v101_v15 = vadd.f32 1.0, %v1145_v14 }
  0xf0   :  { %1146 = vrcp.f32 %v101_v15 }
  0xfa   :  { %v1147_v16 = vpop.eup %1146 }
  0xfb   :  { %v106_v17 = vsub.f32 1.0, %v1147_v16  ;;  %v105_v19 = vmul.f32 0.0, %v1147_v16 }
 0x15e   :  { %v109_v18 = vpop.permute.xlu0 %108 }
 0x15f   :  { %v111_v20 = vmul.f32 %v109_v18, %v106_v17 }
 0x161   :  { %v112_v21 = vadd.f32 %v111_v20, %v105_v19  ;;  %v924_v20 = vld [vmem:[%s1413_s0 + $0x20] sm:$0xff] }
 0x163   :  { %1148 = vtanh.f32 %v112_v21 }
 0x16d   :  { %v1149_v22 = vpop.eup %1148 }
 0x16e   :  { %115 = vrot.lane.b32.xlu0 %v1149_v22, %s1234_s25 }
 0x1e0   :  { %v116_v23 = vpop.permute.xlu0 %115 }
 0x1e1   :  { %v118_v24 = vmul.f32 %v1147_v16, %v116_v23 }
 0x1e3   :  { %122 = vrot.lane.b32.xlu1 %v118_v24, %s1234_s25 }
 0x255   :  { %v123_v25 = vpop.permute.xlu1 %122 }
 0x256   :  { %1003 = vmatmul.mubr.msk.f32.vlgmr.msra.gmra.mrb[0].mxu1 %vm23_vm1, %v123_v25 }
 0x257   :  { %1102 = vmatpush3.bf16.msra.mxu1 %v1271_v4  ;;  %1024 = vmatprep.mubr.msk.f32.mxu1 %vm1231_vm0, %v1232_v6 }
 0x258   :  { %1103 = vmatprep.subr.bf16.mxu1 %v1230_v3 }
 0x25b   :  { %1105 = vmatpush3.bf16.msra.mxu1 %v1282_v7 }
 0x25c   :  { %1112 = vmatprep.subr.bf16.mxu1 %v1230_v3 }
 0x329   :  { %v192_v27 = vpop.f32.mrb[0].mxu1 }
 0x32a   :  { %v196_v28 = vadd.f32 %v915_v26, %v192_v27  ;;  %v1004_v29 = vpop.f32.mrb[1].mxu1 }
 0x32c   :  { %1150 = vtanh.f32 %v196_v28  ;;  %v917_v31 = vmul.f32 -1.442695, %v196_v28 }
 0x32e   :  { %1152 = vpow2.f32 %v917_v31 }
 0x336   :  { %v1151_v30 = vpop.eup %1150 }
 0x337   :  { %207 = vrot.lane.b32.xlu1 %v1151_v30, %s1233_s24 }
 0x338   :  { %v1153_v32 = vpop.eup %1152 }
 0x339   :  { %v200_v33 = vadd.f32 1.0, %v1153_v32 }
 0x33b   :  { %1154 = vrcp.f32 %v200_v33 }
 0x345   :  { %v1155_v34 = vpop.eup %1154 }
 0x346   :  { %v205_v35 = vsub.f32 1.0, %v1155_v34  ;;  %v204_v37 = vmul.f32 %v1155_v34, %v112_v21 }
 0x3a9   :  { %v208_v36 = vpop.permute.xlu1 %207 }
 0x3aa   :  { %v210_v38 = vmul.f32 %v208_v36, %v205_v35 }
 0x3ac   :  { %v211_v39 = vadd.f32 %v210_v38, %v204_v37  ;;  %v927_v38 = vld [vmem:[%s1413_s0 + $0x28] sm:$0xff] }
 0x3ae   :  { %1156 = vtanh.f32 %v211_v39 }
 0x3b8   :  { %v1157_v40 = vpop.eup %1156 }
 0x3b9   :  { %214 = vrot.lane.b32.xlu0 %v1157_v40, %s1234_s25 }
 0x42b   :  { %v215_v41 = vpop.permute.xlu0 %214 }
 0x42c   :  { %v217_v42 = vmul.f32 %v1155_v34, %v215_v41 }
 0x42e   :  { %221 = vrot.lane.b32.xlu1 %v217_v42, %s1234_s25 }
 0x4a0   :  { %v222_v43 = vpop.permute.xlu1 %221 }
 0x4a1   :  { %1014 = vmatmul.mubr.msk.f32.vlgmr.msra.gmra.mrb[2].mxu0 %vm23_vm1, %v222_v43 }
 0x4a2   :  { %1108 = vmatpush3.bf16.msra.mxu0 %v1271_v4  ;;  %1035 = vmatprep.mubr.msk.f32.mxu0 %vm1231_vm0, %v1232_v6 }
 0x4a3   :  { %1109 = vmatprep.subr.bf16.mxu0 %v1230_v3 }
 0x4a6   :  { %1111 = vmatpush3.bf16.msra.mxu0 %v1282_v7 }
 0x4a7   :  { %1118 = vmatprep.subr.bf16.mxu0 %v1230_v3 }
 0x574   :  { %v291_v45 = vpop.f32.mrb[2].mxu0 }
 0x575   :  { %v295_v46 = vadd.f32 %v918_v44, %v291_v45  ;;  %v1015_v47 = vpop.f32.mrb[3].mxu0 }
 0x577   :  { %1158 = vtanh.f32 %v295_v46  ;;  %v920_v49 = vmul.f32 -1.442695, %v295_v46 }
 0x579   :  { %1160 = vpow2.f32 %v920_v49 }
 0x581   :  { %v1159_v48 = vpop.eup %1158 }
 0x582   :  { %306 = vrot.lane.b32.xlu0 %v1159_v48, %s1233_s24 }
 0x583   :  { %v1161_v50 = vpop.eup %1160 }
 0x584   :  { %v299_v51 = vadd.f32 1.0, %v1161_v50 }
 0x586   :  { %1162 = vrcp.f32 %v299_v51 }
 0x590   :  { %v1163_v52 = vpop.eup %1162 }
 0x591   :  { %v304_v53 = vsub.f32 1.0, %v1163_v52  ;;  %v303_v55 = vmul.f32 %v1163_v52, %v211_v39 }
 0x5f4   :  { %v307_v54 = vpop.permute.xlu0 %306 }
 0x5f5   :  { %v309_v56 = vmul.f32 %v307_v54, %v304_v53  ;;  %v930_v54 = vld [vmem:[%s1413_s0 + $0x30] sm:$0xff] }
 0x5f7   :  { %v310_v57 = vadd.f32 %v309_v56, %v303_v55 }
 0x5f9   :  { %1164 = vtanh.f32 %v310_v57 }
 0x603   :  { %v1165_v58 = vpop.eup %1164 }
 0x604   :  { %313 = vrot.lane.b32.xlu1 %v1165_v58, %s1234_s25 }
 0x676   :  { %v314_v59 = vpop.permute.xlu1 %313 }
 0x677   :  { %v316_v60 = vmul.f32 %v1163_v52, %v314_v59 }
 0x679   :  { %320 = vrot.lane.b32.xlu0 %v316_v60, %s1234_s25 }
 0x6eb   :  { %v321_v61 = vpop.permute.xlu0 %320 }
 0x6ec   :  { %1025 = vmatmul.mubr.msk.f32.vlgmr.msra.gmra.mrb[2].mxu1 %vm23_vm1, %v321_v61 }
 0x6ed   :  { %1114 = vmatpush3.bf16.msra.mxu1 %v1271_v4  ;;  %1046 = vmatprep.mubr.msk.f32.mxu1 %vm1231_vm0, %v1232_v6 }
 0x6ee   :  { %1115 = vmatprep.subr.bf16.mxu1 %v1230_v3 }
 0x6f1   :  { %1117 = vmatpush3.bf16.msra.mxu1 %v1282_v7 }
 0x6f2   :  { %1124 = vmatprep.subr.bf16.mxu1 %v1230_v3 }
 0x7bf   :  { %v390_v63 = vpop.f32.mrb[2].mxu1 }
 0x7c0   :  { %v394_v0 = vadd.f32 %v921_v62, %v390_v63  ;;  %v1026_v1 = vpop.f32.mrb[3].mxu1 }
 0x7c2   :  { %1166 = vtanh.f32 %v394_v0  ;;  %v923_v5 = vmul.f32 -1.442695, %v394_v0 }
 0x7c4   :  { %1168 = vpow2.f32 %v923_v5 }
 0x7cc   :  { %v1167_v2 = vpop.eup %1166 }
 0x7cd   :  { %405 = vrot.lane.b32.xlu1 %v1167_v2, %s1233_s24 }
 0x7ce   :  { %v1169_v8 = vpop.eup %1168 }
 0x7cf   :  { %v398_v9 = vadd.f32 1.0, %v1169_v8 }
 0x7d1   :  { %1170 = vrcp.f32 %v398_v9 }
 0x7db   :  { %v1171_v10 = vpop.eup %1170 }
 0x7dc   :  { %v403_v11 = vsub.f32 1.0, %v1171_v10  ;;  %v402_v13 = vmul.f32 %v1171_v10, %v310_v57 }
 0x83f   :  { %v406_v12 = vpop.permute.xlu1 %405 }
 0x840   :  { %v408_v14 = vmul.f32 %v406_v12, %v403_v11  ;;  %v933_v11 = vld [vmem:[%s1413_s0 + $0x38] sm:$0xff] }
 0x842   :  { %v409_v15 = vadd.f32 %v408_v14, %v402_v13 }
 0x844   :  { %1172 = vtanh.f32 %v409_v15 }
 0x84e   :  { %v1173_v16 = vpop.eup %1172 }
 0x84f   :  { %412 = vrot.lane.b32.xlu0 %v1173_v16, %s1234_s25 }
 0x8c1   :  { %v413_v17 = vpop.permute.xlu0 %412 }
 0x8c2   :  { %v415_v18 = vmul.f32 %v1171_v10, %v413_v17 }
 0x8c4   :  { %419 = vrot.lane.b32.xlu1 %v415_v18, %s1234_s25 }
 0x936   :  { %v420_v19 = vpop.permute.xlu1 %419 }
 0x937   :  { %1036 = vmatmul.mubr.msk.f32.vlgmr.msra.gmra.mrb[4].mxu0 %vm23_vm1, %v420_v19 }
 0x938   :  { %1120 = vmatpush3.bf16.msra.mxu0 %v1271_v4  ;;  %1057 = vmatprep.mubr.msk.f32.mxu0 %vm1231_vm0, %v1232_v6 }
 0x939   :  { %1121 = vmatprep.subr.bf16.mxu0 %v1230_v3 }
 0x93c   :  { %1123 = vmatpush3.bf16.msra.mxu0 %v1282_v7 }
 0x93d   :  { %1130 = vmatprep.subr.bf16.mxu0 %v1230_v3 }
 0xa0a   :  { %v489_v21 = vpop.f32.mrb[4].mxu0 }
 0xa0b   :  { %v493_v22 = vadd.f32 %v924_v20, %v489_v21  ;;  %v1037_v23 = vpop.f32.mrb[5].mxu0 }
 0xa0d   :  { %1174 = vtanh.f32 %v493_v22  ;;  %v926_v25 = vmul.f32 -1.442695, %v493_v22 }
 0xa0f   :  { %1176 = vpow2.f32 %v926_v25  ;;  %v812_v25 = vld [vmem:[%s1415_s2] sm:$0xff] }
 0xa17   :  { %v1175_v24 = vpop.eup %1174 }
 0xa18   :  { %504 = vrot.lane.b32.xlu0 %v1175_v24, %s1233_s24 }
 0xa19   :  { %v1177_v26 = vpop.eup %1176 }
 0xa1a   :  { %v497_v27 = vadd.f32 1.0, %v1177_v26  ;;  %v813_v26 = vld [vmem:[%s1415_s2 + $0x8] sm:$0xff] }
 0xa1c   :  { %1178 = vrcp.f32 %v497_v27  ;;  %v814_v27 = vld [vmem:[%s1415_s2 + $0x10] sm:$0xff] }
 0xa26   :  { %v1179_v28 = vpop.eup %1178 }
 0xa27   :  { %v502_v29 = vsub.f32 1.0, %v1179_v28  ;;  %v501_v31 = vmul.f32 %v1179_v28, %v409_v15 }
 0xa8a   :  { %v505_v30 = vpop.permute.xlu0 %504 }
 0xa8b   :  { %v507_v32 = vmul.f32 %v505_v30, %v502_v29  ;;  %v815_v29 = vld [vmem:[%s1415_s2 + $0x18] sm:$0xff]  ;;  %s1235_s2 = smov [#allocation2]  }
 0xa8c   :  { %v1134_v30 = vpack.c.bf16 %v815_v29, %v814_v27  ;;  %s906_s1 = sshll.u32 %s1235_s2, 4  ;;  %s907_s1 = int_to_ptr.vmem [resolvable:$true] %s906_s1 }
 0xa8d   :  { %v508_v33 = vadd.f32 %v507_v32, %v501_v31  ;;  %s1206_s23 = scalar_lea.vmem %s907_s1, 128  ;;  %p1211_p1 = scmp.lt.s32.totalorder %s907_s1, %s907_s1 }
 0xa8e   :  { %p1207_p0 = scmp.ne.s32.totalorder %s907_s1, %s1206_s23  ;;  %p1212_p2 = scmp.lt.s32.totalorder %s1206_s23, %s1206_s23 }
 0xa8f   :  { %1180 = vtanh.f32 %v508_v33 }
 0xa90   :  { %p1213_p3 = por %p1212_p2, %p1211_p1 }
 0xa92   :  { %p1214_p4 = pnand %p1213_p3, %p1207_p0 }
 0xa99   :  { %v1181_v34 = vpop.eup %1180 }
 0xa9a   :  { %511 = vrot.lane.b32.xlu1 %v1181_v34, %s1234_s25 }
 0xb0c   :  { %v512_v35 = vpop.permute.xlu1 %511 }
 0xb0d   :  { %v514_v36 = vmul.f32 %v1179_v28, %v512_v35  ;;  %v1131_v28 = vpack.c.bf16 %v813_v26, %v812_v25  ;;  %v936_v35 = vld [vmem:[%s1416_s3] ss:$0 sm:$0xff] }
 0xb0f   :  { %518 = vrot.lane.b32.xlu0 %v514_v36, %s1234_s25 }
 0xb81   :  { %v519_v37 = vpop.permute.xlu0 %518 }
 0xb82   :  { %1047 = vmatmul.mubr.msk.f32.vlgmr.msra.gmra.mrb[4].mxu1 %vm23_vm1, %v519_v37 }
 0xb83   :  { %1126 = vmatpush3.bf16.msra.mxu1 %v1271_v4  ;;  %1068 = vmatprep.mubr.msk.f32.mxu1 %vm1231_vm0, %v1232_v6 }
 0xb84   :  { %1127 = vmatprep.subr.bf16.mxu1 %v1230_v3 }
 0xb87   :  { %1129 = vmatpush3.bf16.msra.mxu1 %v1282_v7 }
 0xc55   :  { %v588_v39 = vpop.f32.mrb[4].mxu1 }
 0xc56   :  { %v592_v40 = vadd.f32 %v927_v38, %v588_v39  ;;  %v1048_v41 = vpop.f32.mrb[5].mxu1 }
 0xc58   :  { %1182 = vtanh.f32 %v592_v40  ;;  %v929_v43 = vmul.f32 -1.442695, %v592_v40 }
 0xc5a   :  { %1184 = vpow2.f32 %v929_v43 }
 0xc62   :  { %v1183_v42 = vpop.eup %1182 }
 0xc63   :  { %603 = vrot.lane.b32.xlu1 %v1183_v42, %s1233_s24 }
 0xc64   :  { %v1185_v4 = vpop.eup %1184 }
 0xc65   :  { %v596_v44 = vadd.f32 1.0, %v1185_v4 }
 0xc67   :  { %1186 = vrcp.f32 %v596_v44 }
 0xc71   :  { %v1187_v45 = vpop.eup %1186 }
 0xc72   :  { %v601_v46 = vsub.f32 1.0, %v1187_v45  ;;  %v600_v7 = vmul.f32 %v1187_v45, %v508_v33 }
 0xcd5   :  { %v604_v47 = vpop.permute.xlu1 %603 }
 0xcd6   :  { %v606_v48 = vmul.f32 %v604_v47, %v601_v46 }
 0xcd8   :  { %v607_v49 = vadd.f32 %v606_v48, %v600_v7 }
 0xcda   :  { %1188 = vtanh.f32 %v607_v49 }
 0xce4   :  { %v1189_v50 = vpop.eup %1188 }
 0xce5   :  { %610 = vrot.lane.b32.xlu0 %v1189_v50, %s1234_s25 }
 0xd57   :  { %v611_v51 = vpop.permute.xlu0 %610 }
 0xd58   :  { %v613_v52 = vmul.f32 %v1187_v45, %v611_v51 }
 0xd5a   :  { %617 = vrot.lane.b32.xlu1 %v613_v52, %s1234_s25 }
 0xdcc   :  { %v618_v53 = vpop.permute.xlu1 %617 }
 0xdcd   :  { %1058 = vmatmul.mubr.msk.f32.vlgmr.msra.gmra.mrb[6].mxu0 %vm23_vm1, %v618_v53 }
 0xdce   :  { %1079 = vmatprep.mubr.msk.f32.mxu0 %vm1231_vm0, %v1232_v6  ;;  %1132 = vmatpush3.bf16.msra.mxu0 %v1131_v28 }
 0xdcf   :  { %1133 = vmatprep.subr.bf16.mxu0 %v1230_v3 }
 0xdd2   :  { %1135 = vmatpush3.bf16.msra.mxu0 %v1134_v30 }
 0xea0   :  { %v687_v55 = vpop.f32.mrb[6].mxu0 }
 0xea1   :  { %v691_v56 = vadd.f32 %v930_v54, %v687_v55  ;;  %v1059_v57 = vpop.f32.mrb[7].mxu0 }
 0xea3   :  { %1190 = vtanh.f32 %v691_v56  ;;  %v932_v59 = vmul.f32 -1.442695, %v691_v56 }
 0xea5   :  { %1192 = vpow2.f32 %v932_v59 }
 0xead   :  { %v1191_v58 = vpop.eup %1190 }
 0xeae   :  { %702 = vrot.lane.b32.xlu0 %v1191_v58, %s1233_s24 }
 0xeaf   :  { %v1193_v60 = vpop.eup %1192 }
 0xeb0   :  { %v695_v61 = vadd.f32 1.0, %v1193_v60 }
 0xeb2   :  { %1194 = vrcp.f32 %v695_v61 }
 0xebc   :  { %v1195_v62 = vpop.eup %1194 }
 0xebd   :  { %v700_v63 = vsub.f32 1.0, %v1195_v62  ;;  %v699_v6 = vmul.f32 %v1195_v62, %v607_v49 }
 0xf20   :  { %v703_v0 = vpop.permute.xlu0 %702 }
 0xf21   :  { %v705_v1 = vmul.f32 %v703_v0, %v700_v63 }
 0xf23   :  { %v706_v2 = vadd.f32 %v705_v1, %v699_v6 }
 0xf25   :  { %1196 = vtanh.f32 %v706_v2 }
 0xf2f   :  { %v1197_v5 = vpop.eup %1196 }
 0xf30   :  { %709 = vrot.lane.b32.xlu1 %v1197_v5, %s1234_s25 }
 0xfa2   :  { %v710_v8 = vpop.permute.xlu1 %709 }
 0xfa3   :  { %v712_v9 = vmul.f32 %v1195_v62, %v710_v8 }
 0xfa5   :  { %716 = vrot.lane.b32.xlu0 %v712_v9, %s1234_s25 }
0x1017   :  { %v717_v10 = vpop.permute.xlu0 %716 }
0x1018   :  { %1069 = vmatmul.mubr.msk.f32.vlgmr.msra.gmra.mrb[6].mxu1 %vm23_vm1, %v717_v10 }
0x10eb   :  { %v786_v12 = vpop.f32.mrb[6].mxu1 }
0x10ec   :  { %v790_v13 = vadd.f32 %v933_v11, %v786_v12  ;;  %v1070_v14 = vpop.f32.mrb[7].mxu1 }
0x10ee   :  { %1198 = vtanh.f32 %v790_v13  ;;  %v935_v16 = vmul.f32 -1.442695, %v790_v13 }
0x10f0   :  { %1200 = vpow2.f32 %v935_v16 }
0x10f8   :  { %v1199_v15 = vpop.eup %1198 }
0x10f9   :  { %801 = vrot.lane.b32.xlu1 %v1199_v15, %s1233_s24 }
0x10fa   :  { %v1201_v17 = vpop.eup %1200 }
0x10fb   :  { %v794_v18 = vadd.f32 1.0, %v1201_v17 }
0x10fd   :  { %1202 = vrcp.f32 %v794_v18 }
0x1107   :  { %v1203_v19 = vpop.eup %1202 }
0x1108   :  { %v799_v20 = vsub.f32 1.0, %v1203_v19  ;;  %v798_v22 = vmul.f32 %v1203_v19, %v706_v2 }
0x116b   :  { %v802_v21 = vpop.permute.xlu1 %801 }
0x116c   :  { %v804_v23 = vmul.f32 %v802_v21, %v799_v20 }
0x116e   :  { %v805_v24 = vadd.f32 %v804_v23, %v798_v22 }
0x1170   :  { %1204 = vtanh.f32 %v805_v24 }
0x117a   :  { %v1205_v31 = vpop.eup %1204 }
0x117b   :  { %808 = vrot.lane.b32.xlu0 %v1205_v31, %s1234_s25 }
0x11ed   :  { %v809_v32 = vpop.permute.xlu0 %808 }
0x11ee   :  { %v811_v33 = vmul.f32 %v1203_v19, %v809_v32 }
0x11f0   :  { %824 = vrot.lane.b32.xlu1 %v811_v33, %s1234_s25 }
0x1262   :  { %v825_v34 = vpop.permute.xlu1 %824 }
0x1263   :  { %1080 = vmatmul.mubr.msk.f32.vlgmr.msra.gmra.mrb[8].mxu0 %vm23_vm1, %v825_v34 }
0x1336   :  { %v894_v36 = vpop.f32.mrb[8].mxu0 }
0x1337   :  { %v895_v3 = vadd.f32 %v936_v35, %v894_v36  ;;  %v1081_v37 = vpop.f32.mrb[9].mxu0 }
0x1339   :  { %899 = vst.msk [vmem:[#allocation2] sm:$0xff] %vm898_vm2, %v895_v3 }
0x133a   :  { %1217 = shalt.err (!%p1214_p4)
}
0x133b   :  { %s1218_s26 = scalar_lea.hbm %s1417_s4, 128 }
0x133c   :  { %p1219_p5 = scmp.ne.s32.totalorder %s1417_s4, %s1218_s26  ;;  %p1222_p6 = scmp.lt.u32.totalorder %s1218_s26, %s1417_s4 }
0x133e   :  { %p1224_p7 = pnand %p1222_p6, %p1219_p5 }
0x1340   :  { %1227 = shalt.err (!%p1224_p7)
}
0x1341   :  { %909 = dma.vmem_to_hbm [thread:$0]  %s907_s1, 128, %s1417_s4, [#allocation3]  }
0x1342   :  { %1228 = dma.done.wait [#allocation3], 128  }
0x1343   :  { %1229 = vsyncadd [#allocation3], 4294967168 }
0x1344   :  { %913 = vsyncpa [#allocation3], 1 }

</bundles_post_ra>
